<compile_context>
chip_gen: v5e
topology: v5e:2x2
jax: 0.10.0
libtpu: 0.0.40
codegen_flags: <defaults>
</compile_context>

<pallas_src>
import functools

import jax
import jax.numpy as jnp
from jax.experimental import pallas as pl
from jax.experimental.pallas import tpu as pltpu

# Stand-in for ModelUtil.NAIVE_EPS (not provided in the source).
NAIVE_EPS = 1e-6

_LANE_CHUNK = 512  # lanes of (batch*feature) processed per grid step


class NaNPredException(ValueError):
    def __init__(self):
        super().__init__("Pred has NaN!")


def _round_up(x, m):
    return ((x + m - 1) // m) * m


def _rmsse_kernel(past_ref, future_ref, pred_ref, out_ref, *, eps, n_naive):
    """One grid step == one lane chunk of (batch*feature) columns.

    past_ref:   (L_pad, C)  time x columns, zero-padded past row n_naive-1
    future_ref: (Tf, C)
    pred_ref:   (Tf, C)
    out_ref:    (1, C)      per-column rmsse (lane-dense)
    """
    past = past_ref[...]
    fut = future_ref[...]
    prd = pred_ref[...]

    l_pad = past.shape[0]
    # naive(past): first difference along time. One sublane rotate (XLU slot)
    # plus a mask, instead of two overlapping slices.
    nxt = pltpu.roll(past, shift=l_pad - 1, axis=0)       # nxt[t] = past[(t+1) % l_pad]
    dn = past - nxt
    t_idx = jax.lax.broadcasted_iota(jnp.int32, dn.shape, 0)
    dn = jnp.where(t_idx < n_naive - 1, dn, 0.0)          # keep rows 0 .. n_naive-2
    mse_naive = jnp.sum(dn * dn, axis=0, keepdims=True) * (1.0 / (n_naive - 1))

    err = prd - fut
    mse_err = jnp.sum(err * err, axis=0, keepdims=True) * (1.0 / prd.shape[0])

    # sqrt(mse_err / (mse_naive + eps)) == sqrt(mse_err) * rsqrt(mse_naive + eps)
    # (rsqrt goes to the otherwise-idle EUP slot, removing the VPU divide).
    out_ref[...] = jnp.sqrt(mse_err) * jax.lax.rsqrt(mse_naive + eps)


def rmsse_loss(past, future, pred, *, reduction="sum", limit_naive=30, eps=NAIVE_EPS):
    """past: (B, Tp, F), future: (B, Tf, F), pred: (B, Tf, F) -> scalar loss.

    Fully jit-able (no host sync). NaNs in `pred` propagate to a NaN loss;
    use `rmsse_loss_checked` for the PyTorch-style NaNPredException.
    """
    past = jnp.asarray(past, jnp.float32)
    future = jnp.asarray(future, jnp.float32)
    pred = jnp.asarray(pred, jnp.float32)

    B, _, F = past.shape
    _, Tf, _ = future.shape

    if limit_naive:
        past = past[:, -limit_naive:, :]
    L = past.shape[1]
    if L < 2:
        raise ValueError("Need at least 2 past steps for the naive baseline.")

    # ---- wrapper-side layout plumbing: time -> sublanes, (B*F) -> lanes ----
    n = B * F
    cw = min(_LANE_CHUNK, _round_up(n, 128))      # lane chunk, multiple of 128
    n_pad = _round_up(n, cw)
    l_pad = _round_up(L, 8)                       # sublane-aligned time for past

    past_t = jnp.transpose(past, (1, 0, 2)).reshape(L, n)
    fut_t = jnp.transpose(future, (1, 0, 2)).reshape(Tf, n)
    prd_t = jnp.transpose(pred, (1, 0, 2)).reshape(Tf, n)

    # Zero padding is exact: padded columns give rmsse == 0 and add nothing.
    past_t = jnp.pad(past_t, ((0, l_pad - L), (0, n_pad - n)))
    fut_t = jnp.pad(fut_t, ((0, 0), (0, n_pad - n)))
    prd_t = jnp.pad(prd_t, ((0, 0), (0, n_pad - n)))

    num_blocks = n_pad // cw
    # Per-block VMEM footprint is tiny (~(l_pad + 2*Tf) * cw * 4 bytes, double
    # buffered) -- far below the 32 MiB scoped default on v5e/v6e/v7x.

    per_col = pl.pallas_call(
        functools.partial(_rmsse_kernel, eps=float(eps), n_naive=L),
        out_shape=jax.ShapeDtypeStruct((1, n_pad), jnp.float32),
        grid_spec=pltpu.PrefetchScalarGridSpec(
            num_scalar_prefetch=0,
            grid=(num_blocks,),
            in_specs=[
                pl.BlockSpec((l_pad, cw), lambda i: (0, i)),  # past
                pl.BlockSpec((Tf, cw), lambda i: (0, i)),     # future
                pl.BlockSpec((Tf, cw), lambda i: (0, i)),     # pred
            ],
            out_specs=pl.BlockSpec((1, cw), lambda i: (0, i)),  # disjoint slabs
        ),
        compiler_params=pltpu.CompilerParams(
            # Each step writes its own output slab -> shardable across
            # TensorCores on v7x; harmless on single-TC v5e/v6e.
            dimension_semantics=("parallel",),
        ),
    )(past_t, fut_t, prd_t)

    total = jnp.sum(per_col)                      # sum over features and batch
    if reduction in ("mean", "avg"):
        return total / B
    elif reduction == "sum":
        return total
    else:
        raise ValueError(f"Invalid reduction {reduction}")


def rmsse_loss_checked(past, future, pred, **kwargs):
    """Eager-only convenience mirroring the PyTorch NaNPredException raise."""
    # TODO(synk): under jit, prefer jax.experimental.checkify for the NaN raise.
    if bool(jnp.any(jnp.isnan(jnp.asarray(pred)))):
        raise NaNPredException()
    return rmsse_loss(past, future, pred, **kwargs)


def _rmsse_ref(past, future, pred, limit_naive=30, eps=NAIVE_EPS, reduction="sum"):
    """Pure-JAX reference matching the PyTorch module."""
    p = jnp.asarray(past, jnp.float32)[:, -limit_naive:, :]
    dn = p[:, :-1] - p[:, 1:]
    mse_naive = jnp.mean(dn * dn, axis=-2)
    err = jnp.asarray(pred, jnp.float32) - jnp.asarray(future, jnp.float32)
    mse_err = jnp.mean(err * err, axis=-2)
    r = jnp.sqrt(mse_err / (mse_naive + eps))     # (B, F)
    r = jnp.sum(r, axis=-1)                       # (B,)
    if reduction in ("mean", "avg"):
        return jnp.mean(r, axis=0)
    return jnp.sum(r, axis=0)


if __name__ == "__main__":
    key = jax.random.PRNGKey(0)

    for (B, Tp, Tf, F) in [(2, 40, 8, 4), (24, 48, 12, 32)]:
        k1, k2, k3, key = jax.random.split(key, 4)
        past = jax.random.normal(k1, (B, Tp, F), dtype=jnp.float32)
        future = jax.random.normal(k2, (B, Tf, F), dtype=jnp.float32)
        pred = jax.random.normal(k3, (B, Tf, F), dtype=jnp.float32)

        for reduction in ("sum", "mean"):
            loss_fn = jax.jit(
                functools.partial(rmsse_loss, reduction=reduction, limit_naive=30)
            )
            loss = jax.block_until_ready(loss_fn(past, future, pred))
            ref = _rmsse_ref(past, future, pred, reduction=reduction)
            assert jnp.allclose(loss, ref, rtol=1e-4, atol=1e-5), (
                (B, Tp, Tf, F), reduction, float(loss), float(ref))

    print("KERNEL_OK")
</pallas_src>

<mosaic_0001>
module attributes {stable_mosaic.version = 11 : i64} {
  func.func @_rmsse_kernel(%arg0: i32, %arg1: memref<32x128xf32, #tpu.memory_space<vmem>>, %arg2: memref<8x128xf32, #tpu.memory_space<vmem>>, %arg3: memref<8x128xf32, #tpu.memory_space<vmem>>, %arg4: memref<1x128xf32, #tpu.memory_space<vmem>>) attributes {dimension_semantics = [#tpu.dimension_semantics<parallel>], iteration_bounds = array<i64: 1>, scalar_prefetch = 0 : i64, scratch_operands = 0 : i64, tpu.core_type = #tpu.core_type<tc>, window_params = [{transform_indices = @transform_0, window_bounds = array<i64: 32, 128>}, {transform_indices = @transform_1, window_bounds = array<i64: 8, 128>}, {transform_indices = @transform_2, window_bounds = array<i64: 8, 128>}, {transform_indices = @transform_3, window_bounds = array<i64: 1, 128>}]} {
    %c0 = arith.constant 0 : index
    %c0_0 = arith.constant 0 : index
    %0 = vector.load %arg1[%c0, %c0_0] : memref<32x128xf32, #tpu.memory_space<vmem>>, vector<32x128xf32>
    %c0_1 = arith.constant 0 : index
    %c0_2 = arith.constant 0 : index
    %1 = vector.load %arg2[%c0_1, %c0_2] : memref<8x128xf32, #tpu.memory_space<vmem>>, vector<8x128xf32>
    %c0_3 = arith.constant 0 : index
    %c0_4 = arith.constant 0 : index
    %2 = vector.load %arg3[%c0_3, %c0_4] : memref<8x128xf32, #tpu.memory_space<vmem>>, vector<8x128xf32>
    %c31_i32 = arith.constant 31 : i32
    %3 = tpu.dynamic_rotate %0 by %c31_i32 dim 0 : vector<32x128xf32>, i32 -> vector<32x128xf32>
    %4 = arith.subf %0, %3 : vector<32x128xf32>
    %5 = tpu.iota {dimensions = array<i32: 0>} : vector<32x128xi32>
    %c29_i32 = arith.constant 29 : i32
    %6 = vector.broadcast %c29_i32 : i32 to vector<32x128xi32>
    %7 = arith.cmpi slt, %5, %6 : vector<32x128xi32>
    %cst = arith.constant 0.000000e+00 : f32
    %8 = vector.broadcast %cst : f32 to vector<32x128xf32>
    %9 = arith.select %7, %4, %8 : vector<32x128xi1>, vector<32x128xf32>
    %10 = arith.mulf %9, %9 : vector<32x128xf32>
    %cst_5 = arith.constant dense<0.000000e+00> : vector<128xf32>
    %11 = vector.multi_reduction <add>, %10, %cst_5 [0] : vector<32x128xf32> to vector<128xf32>
    %12 = vector.shape_cast %11 : vector<128xf32> to vector<1x128xf32>
    %cst_6 = arith.constant 0.0344827585 : f32
    %13 = vector.broadcast %cst_6 : f32 to vector<1x128xf32>
    %14 = arith.mulf %12, %13 : vector<1x128xf32>
    %15 = arith.subf %2, %1 : vector<8x128xf32>
    %16 = arith.mulf %15, %15 : vector<8x128xf32>
    %cst_7 = arith.constant dense<0.000000e+00> : vector<128xf32>
    %17 = vector.multi_reduction <add>, %16, %cst_7 [0] : vector<8x128xf32> to vector<128xf32>
    %18 = vector.shape_cast %17 : vector<128xf32> to vector<1x128xf32>
    %cst_8 = arith.constant 1.250000e-01 : f32
    %19 = vector.broadcast %cst_8 : f32 to vector<1x128xf32>
    %20 = arith.mulf %18, %19 : vector<1x128xf32>
    %21 = math.sqrt %20 : vector<1x128xf32>
    %cst_9 = arith.constant 9.99999997E-7 : f32
    %22 = vector.broadcast %cst_9 : f32 to vector<1x128xf32>
    %23 = arith.addf %14, %22 : vector<1x128xf32>
    %24 = math.rsqrt %23 : vector<1x128xf32>
    %25 = arith.mulf %21, %24 : vector<1x128xf32>
    %c0_10 = arith.constant 0 : index
    %c0_11 = arith.constant 0 : index
    %26 = vector.load %arg4[%c0_10, %c0_11] : memref<1x128xf32, #tpu.memory_space<vmem>>, vector<1x128xf32>
    tpu.vector_store %arg4[%c0_10, %c0_11], %25 {strides = array<i32>} : memref<1x128xf32, #tpu.memory_space<vmem>>, vector<1x128xf32>,
    return
  }
  func.func @transform_0(%arg0: i32) -> (i32, i32) {
    %c0_i32 = arith.constant 0 : i32
    %c0_i32_0 = arith.constant 0 : i32
    return %c0_i32, %arg0 : i32, i32
  }
  func.func @transform_1(%arg0: i32) -> (i32, i32) {
    %c0_i32 = arith.constant 0 : i32
    %c0_i32_0 = arith.constant 0 : i32
    return %c0_i32, %arg0 : i32, i32
  }
  func.func @transform_2(%arg0: i32) -> (i32, i32) {
    %c0_i32 = arith.constant 0 : i32
    %c0_i32_0 = arith.constant 0 : i32
    return %c0_i32, %arg0 : i32, i32
  }
  func.func @transform_3(%arg0: i32) -> (i32, i32) {
    %c0_i32 = arith.constant 0 : i32
    %c0_i32_0 = arith.constant 0 : i32
    return %c0_i32, %arg0 : i32, i32
  }
}

</mosaic_0001>

<bundles_post_ra>
// kernel: rmsse_loss.1
= control target key start
LH: loop header
LB: loop body
LE: loop exit
PB: predicated region body
PF: predicated region fallthrough
CT: control target
= control target key end

     0   :  { %v24_v0 = vlaneseq  ;;  %s143_s0 = inlined_call_operand.vmem [shape: f32[32,128], index: 0, kind: input, shape index: {}]   ;;  %s144_s1 = inlined_call_operand.vmem [shape: f32[8,128], index: 1, kind: input, shape index: {}]   ;;  %s145_s2 = inlined_call_operand.vmem [shape: f32[8,128], index: 2, kind: input, shape index: {}]   ;;  %s146_s3 = inlined_call_operand.vmem [shape: f32[1,128], index: 3, kind: output, shape index: {}]  }
   0x1   :  { %v14_v1 = vld [vmem:[%s143_s0] sm:$0xff]  ;;  %v15_v2 = vld [vmem:[%s143_s0 + $0x8] sm:$0xff]  ;;  %v16_v3 = vld [vmem:[%s143_s0 + $0x10] sm:$0xff] }
   0x2   :  { %v17_v4 = vld [vmem:[%s143_s0 + $0x18] sm:$0xff]  ;;  %v18_v5 = vld [vmem:[%s144_s1] sm:$0xff]  ;;  %v20_v7 = vrot.slane %v14_v1, 1  ;;  %v21_v8 = vrot.slane %v15_v2, 1  ;;  %v22_v9 = vrot.slane %v16_v3, 1  ;;  %v25_v11 = vshrl.u32 %v24_v0, 7 }
   0x3   :  { %v19_v6 = vld [vmem:[%s145_s2] sm:$0xff]  ;;  %v23_v10 = vrot.slane %v17_v4, 1 }
   0x4   :  { %v60_v12 = vsub.f32 %v19_v6, %v18_v5  ;;  %vm26_vm0 = vcmp.lt.s32.totalorder %v25_v11, 7  ;;  %v37_v13 = vadd.s32 24, %v25_v11 }
   0x5   :  { %v27_v15 = vsel %vm26_vm0, %v22_v9, %v23_v10  ;;  %v28_v16 = vsel %vm26_vm0, %v21_v8, %v22_v9  ;;  %v29_v17 = vsel %vm26_vm0, %v20_v7, %v21_v8  ;;  %v30_v18 = vsel %vm26_vm0, %v23_v10, %v20_v7 }
   0x6   :  { %v61_v14 = vmul.f32 %v60_v12, %v60_v12  ;;  %v31_v19 = vsub.f32 %v14_v1, %v29_v17  ;;  %v32_v20 = vsub.f32 %v15_v2, %v28_v16  ;;  %v33_v21 = vsub.f32 %v16_v3, %v27_v15 }
   0x7   :  { %v34_v22 = vsub.f32 %v17_v4, %v30_v18  ;;  %vm41_vm1 = vcmp.lt.s32.totalorder %v37_v13, 29 }
   0x8   :  { %v62_v23 = vrot.slane %v61_v14, 4  ;;  %v46_v25 = vmul.f32 %v31_v19, %v31_v19  ;;  %v47_v26 = vmul.f32 %v32_v20, %v32_v20  ;;  %v48_v27 = vmul.f32 %v33_v21, %v33_v21 }
   0x9   :  { %v45_v24 = vsel %vm41_vm1, %v34_v22, 0.0 }
   0xa   :  { %v63_v28 = vadd.f32 %v62_v23, %v61_v14  ;;  %v49_v29 = vmul.f32 %v45_v24, %v45_v24  ;;  %v50_v30 = vadd.f32 %v47_v26, %v46_v25 }
   0xc   :  { %v64_v31 = vrot.slane %v63_v28, 2  ;;  %v51_v32 = vadd.f32 %v50_v30, %v48_v27 }
   0xe   :  { %v65_v33 = vadd.f32 %v64_v31, %v63_v28  ;;  %v52_v34 = vadd.f32 %v51_v32, %v49_v29 }
  0x10   :  { %v66_v35 = vrot.slane %v65_v33, 1  ;;  %v53_v36 = vrot.slane %v52_v34, 4 }
  0x12   :  { %v67_v37 = vadd.f32 %v66_v35, %v65_v33  ;;  %v54_v38 = vadd.f32 %v53_v36, %v52_v34 }
  0x14   :  { %v68_v39 = vmul.f32 0.125, %v67_v37  ;;  %v55_v40 = vrot.slane %v54_v38, 2 }
  0x16   :  { %98 = vrsqrt.f32 %v68_v39  ;;  %v56_v41 = vadd.f32 %v55_v40, %v54_v38  ;;  %vm76_vm2 = vcmp.eq.f32.partialorder %v68_v39, inf  ;;  %v79_v56 = vand.u32 2147483648, %v68_v39 }
  0x17   :  { %vm78_vm5 = vcmp.eq.f32.partialorder %v68_v39, 0.0 }
  0x18   :  { %v57_v42 = vrot.slane %v56_v41, 1 }
  0x1a   :  { %v58_v43 = vadd.f32 %v57_v42, %v56_v41 }
  0x1c   :  { %v99_v44 = vpop.eup %98  ;;  %v59_v45 = vmul.f32 0.03448276, %v58_v43 }
  0x1d   :  { %v70_v46 = vmul.f32 %v99_v44, %v68_v39 }
  0x1e   :  { %v81_v48 = vadd.f32 1e-06, %v59_v45 }
  0x1f   :  { %v71_v47 = vmul.f32 %v99_v44, %v70_v46 }
  0x20   :  { %100 = vrsqrt.f32 %v81_v48  ;;  %vm88_vm3 = vweird.f32 %v81_v48 }
  0x21   :  { %v72_v49 = vmul.f32 0.5, %v71_v47 }
  0x23   :  { %v73_v50 = vsub.f32 1.5, %v72_v49 }
  0x25   :  { %v74_v51 = vmul.f32 %v99_v44, %v73_v50 }
  0x26   :  { %v101_v52 = vpop.eup %100 }
  0x27   :  { %v83_v53 = vmul.f32 %v101_v52, %v81_v48  ;;  %v75_v54 = vmul.f32 %v74_v51, %v68_v39  ;;  %vm89_vm4 = vweird.f32 %v101_v52 }
  0x28   :  { %vm90_vm6 = vmor %vm88_vm3, %vm89_vm4 }
  0x29   :  { %v84_v55 = vmul.f32 %v101_v52, %v83_v53  ;;  %v77_v58 = vsel %vm76_vm2, %v68_v39, %v75_v54 }
  0x2a   :  { %v80_v60 = vsel %vm78_vm5, %v79_v56, %v77_v58 }
  0x2b   :  { %v85_v57 = vmul.f32 0.5, %v84_v55 }
  0x2d   :  { %v86_v59 = vsub.f32 1.5, %v85_v57 }
  0x2f   :  { %v87_v61 = vmul.f32 %v101_v52, %v86_v59 }
  0x31   :  { %v91_v62 = vsel %vm90_vm6, %v101_v52, %v87_v61 }
  0x32   :  { %v92_v63 = vmul.f32 %v91_v62, %v80_v60 }
  0x34   :  { %93 = vst [vmem:[%s146_s3] sm:$0x1] %v92_v63 }

</bundles_post_ra>
